<compile_context>
chip_gen: v7x
topology: tpu7x:2x2x1
jax: 0.10.0
libtpu: 0.0.40
codegen_flags: <defaults>
</compile_context>

<pallas_src>
import math

import jax
import jax.numpy as jnp
from jax.experimental import pallas as pl
from jax.experimental.pallas import tpu as pltpu


# ----------------------------------------------------------------------------- Pallas kernel

def _ffn_kernel(x_ref, w1_ref, b1_ref, w2_ref, b2_ref, o_ref):
    """Fused: Linear(C,C) + bias + ReLU + Linear(C,C) + bias + residual, for one row tile."""
    x_bf = x_ref[...]                                                # (tile_n, C) bf16
    # fc1: bf16 x bf16 -> f32 accumulate; bias + ReLU in f32
    h = jnp.dot(x_bf, w1_ref[...], preferred_element_type=jnp.float32)
    h = jnp.maximum(h + b1_ref[...], 0.0)
    # fc2: bf16 x bf16 -> f32 accumulate; bias + residual in f32
    y = jnp.dot(h.astype(jnp.bfloat16), w2_ref[...],
                preferred_element_type=jnp.float32)
    y = y + b2_ref[...] + x_bf.astype(jnp.float32)
    o_ref[...] = y.astype(o_ref.dtype)                               # bf16 writeback


# ----------------------------------------------------------------------------- wrapper

def _choose_tile_n(n, *, max_tile=512, min_tile=64, target_steps=8):
    """Largest row tile <= max_tile (multiple of 8) that still yields ~target_steps grid
    steps when n allows, so v7x's two TensorCores each get several 'parallel' steps."""
    if n <= min_tile:
        return n                                    # single full-extent block
    balanced = math.ceil(math.ceil(n / target_steps) / 8) * 8
    return max(min_tile, min(max_tile, balanced, n))


def ffn_forward(x, w1, b1, w2, b2, *, tile_n=512):
    """x: (..., C_in) float (cast to bf16 at the boundary); w1,w2: bf16; b1,b2: f32 (1, C).

    Returns bf16 of shape (..., C_out); math (accumulate/bias/ReLU/residual) is f32 in-kernel.
    """
    orig_shape = x.shape
    c_in = orig_shape[-1]
    c_out = w2.shape[1]
    assert c_out == c_in, "residual add requires out_features == in_features"

    x2 = x.reshape(-1, c_in).astype(jnp.bfloat16)                    # token-major (N, C), bf16
    n = x2.shape[0]
    tile = _choose_tile_n(n, max_tile=tile_n)
    grid = (pl.cdiv(n, tile),)

    # Advisory cost hint: 2 matmuls of (n, C) x (C, C), activation + weight + bias bytes.
    flops = 2 * n * c_in * c_in + 2 * n * c_in * c_out
    bytes_accessed = (
        n * c_in * 2 + n * c_out * 2                                  # bf16 activations in/out
        + (w1.size + w2.size) * 2                                     # bf16 weights
        + (b1.size + b2.size) * 4                                     # f32 biases
    )

    out = pl.pallas_call(
        _ffn_kernel,
        out_shape=jax.ShapeDtypeStruct((n, c_out), jnp.bfloat16),
        grid=grid,
        in_specs=[
            pl.BlockSpec((tile, c_in), lambda i: (i, 0)),            # x row tile (bf16)
            pl.BlockSpec((c_in, c_in), lambda i: (0, 0)),            # w1 (bf16, grid-invariant)
            pl.BlockSpec((1, c_in), lambda i: (0, 0)),               # b1 (f32)
            pl.BlockSpec((c_in, c_out), lambda i: (0, 0)),           # w2 (bf16, grid-invariant)
            pl.BlockSpec((1, c_out), lambda i: (0, 0)),              # b2 (f32)
        ],
        out_specs=pl.BlockSpec((tile, c_out), lambda i: (i, 0)),
        compiler_params=pltpu.CompilerParams(
            dimension_semantics=("parallel",),                       # v7x: rows split across TCs
        ),
        cost_estimate=pl.CostEstimate(
            flops=flops, transcendentals=0, bytes_accessed=bytes_accessed),
    )(x2, w1, b1, w2, b2)
    return out.reshape(orig_shape[:-1] + (c_out,))


# ----------------------------------------------------------------------------- params / reference

def init_ffn_params(key, in_features, out_features):
    # PyTorch nn.Linear-style uniform(-1/sqrt(fan_in), 1/sqrt(fan_in)); weights cast to bf16.
    k1, k2, k3, k4 = jax.random.split(key, 4)
    b_in = 1.0 / math.sqrt(in_features)
    w1 = jax.random.uniform(k1, (in_features, in_features), jnp.float32, -b_in, b_in)
    b1 = jax.random.uniform(k2, (1, in_features), jnp.float32, -b_in, b_in)
    w2 = jax.random.uniform(k3, (in_features, out_features), jnp.float32, -b_in, b_in)
    b2 = jax.random.uniform(k4, (1, out_features), jnp.float32, -b_in, b_in)
    return w1.astype(jnp.bfloat16), b1, w2.astype(jnp.bfloat16), b2


def ffn_reference(x, w1, b1, w2, b2):
    # Pure-JAX reference mirroring the kernel numerics (bf16 operands, f32 accumulate,
    # f32 bias/ReLU/residual).  The kernel additionally rounds the output to bf16.
    c = x.shape[-1]
    xf = x.reshape(-1, c).astype(jnp.bfloat16).astype(jnp.float32)
    h = jnp.dot(xf, w1.astype(jnp.float32), precision="highest") + b1
    h = jnp.maximum(h, 0.0)
    y = jnp.dot(h.astype(jnp.bfloat16).astype(jnp.float32),
                w2.astype(jnp.float32), precision="highest") + b2
    return (y + xf).reshape(x.shape)


# ----------------------------------------------------------------------------- main

if __name__ == "__main__":
    key = jax.random.PRNGKey(0)
    kp, kx = jax.random.split(key)

    # Small shapes consistent with the module: a (batch, tokens, channels) feature map,
    # FFN(in_features=192, out_features=192) as used at the first GraphMIL stage.
    B, N, C = 2, 128, 192

    w1, b1, w2, b2 = init_ffn_params(kp, C, C)
    # Activations are produced/consumed in bf16 in the surrounding network; generate bf16
    # directly so the kernel's bf16 boundary does not add a wrapper-side cast.
    x = jax.random.normal(kx, (B, N, C), jnp.bfloat16)

    # DropPath(p=0.0) is nn.Identity in the reference module -> nothing to implement.
    out = ffn_forward(x, w1, b1, w2, b2)
    out = jax.block_until_ready(out)

    assert out.shape == (B, N, C)
    assert out.dtype == jnp.bfloat16
    out_f32 = out.astype(jnp.float32)
    assert bool(jnp.all(jnp.isfinite(out_f32)))

    ref = ffn_reference(x.astype(jnp.float32), w1, b1, w2, b2)
    assert bool(jnp.allclose(out_f32, ref, rtol=3e-2, atol=3e-2))

    print("KERNEL_OK")
</pallas_src>

<mosaic_0001>
module attributes {stable_mosaic.version = 11 : i64} {
  func.func @_ffn_kernel(%arg0: i32, %arg1: memref<64x192xbf16, #tpu.memory_space<vmem>>, %arg2: memref<192x192xbf16, #tpu.memory_space<vmem>>, %arg3: memref<1x192xf32, #tpu.memory_space<vmem>>, %arg4: memref<192x192xbf16, #tpu.memory_space<vmem>>, %arg5: memref<1x192xf32, #tpu.memory_space<vmem>>, %arg6: memref<64x192xbf16, #tpu.memory_space<vmem>>) attributes {dimension_semantics = [#tpu.dimension_semantics<parallel>], iteration_bounds = array<i64: 4>, scalar_prefetch = 0 : i64, scratch_operands = 0 : i64, tpu.core_type = #tpu.core_type<tc>, window_params = [{transform_indices = @transform_0, window_bounds = array<i64: 64, 192>}, {pipeline_mode = #tpu.pipeline_mode<synchronous>, transform_indices = @transform_1, window_bounds = array<i64: 192, 192>}, {pipeline_mode = #tpu.pipeline_mode<synchronous>, transform_indices = @transform_2, window_bounds = array<i64: 1, 192>}, {pipeline_mode = #tpu.pipeline_mode<synchronous>, transform_indices = @transform_3, window_bounds = array<i64: 192, 192>}, {pipeline_mode = #tpu.pipeline_mode<synchronous>, transform_indices = @transform_4, window_bounds = array<i64: 1, 192>}, {transform_indices = @transform_5, window_bounds = array<i64: 64, 192>}]} {
    %c0 = arith.constant 0 : index
    %c0_0 = arith.constant 0 : index
    %0 = vector.load %arg1[%c0, %c0_0] : memref<64x192xbf16, #tpu.memory_space<vmem>>, vector<64x192xbf16>
    %c0_1 = arith.constant 0 : index
    %c0_2 = arith.constant 0 : index
    %1 = vector.load %arg2[%c0_1, %c0_2] : memref<192x192xbf16, #tpu.memory_space<vmem>>, vector<192x192xbf16>
    %cst = arith.constant dense<0.000000e+00> : vector<64x192xf32>
    %2 = tpu.matmul %0, %1, %cst {dimension_numbers = #tpu.dot_dimension_numbers<[1], [0], [0], [1], [0, 0, 1, 1], [], []>} : vector<64x192xbf16>, vector<192x192xbf16>, vector<64x192xf32> -> vector<64x192xf32>
    %c0_3 = arith.constant 0 : index
    %c0_4 = arith.constant 0 : index
    %3 = vector.load %arg3[%c0_3, %c0_4] : memref<1x192xf32, #tpu.memory_space<vmem>>, vector<1x192xf32>
    %4 = vector.broadcast %3 : vector<1x192xf32> to vector<64x192xf32>
    %5 = arith.addf %2, %4 : vector<64x192xf32>
    %cst_5 = arith.constant 0.000000e+00 : f32
    %6 = vector.broadcast %cst_5 : f32 to vector<64x192xf32>
    %7 = arith.maximumf %5, %6 : vector<64x192xf32>
    %8 = arith.truncf %7 : vector<64x192xf32> to vector<64x192xbf16>
    %c0_6 = arith.constant 0 : index
    %c0_7 = arith.constant 0 : index
    %9 = vector.load %arg4[%c0_6, %c0_7] : memref<192x192xbf16, #tpu.memory_space<vmem>>, vector<192x192xbf16>
    %cst_8 = arith.constant dense<0.000000e+00> : vector<64x192xf32>
    %10 = tpu.matmul %8, %9, %cst_8 {dimension_numbers = #tpu.dot_dimension_numbers<[1], [0], [0], [1], [0, 0, 1, 1], [], []>} : vector<64x192xbf16>, vector<192x192xbf16>, vector<64x192xf32> -> vector<64x192xf32>
    %c0_9 = arith.constant 0 : index
    %c0_10 = arith.constant 0 : index
    %11 = vector.load %arg5[%c0_9, %c0_10] : memref<1x192xf32, #tpu.memory_space<vmem>>, vector<1x192xf32>
    %12 = vector.broadcast %11 : vector<1x192xf32> to vector<64x192xf32>
    %13 = arith.addf %10, %12 : vector<64x192xf32>
    %14 = arith.extf %0 : vector<64x192xbf16> to vector<64x192xf32>
    %15 = arith.addf %13, %14 : vector<64x192xf32>
    %16 = arith.truncf %15 : vector<64x192xf32> to vector<64x192xbf16>
    %c0_11 = arith.constant 0 : index
    %c0_12 = arith.constant 0 : index
    %17 = vector.load %arg6[%c0_11, %c0_12] : memref<64x192xbf16, #tpu.memory_space<vmem>>, vector<64x192xbf16>
    tpu.vector_store %arg6[%c0_11, %c0_12], %16 {strides = array<i32>} : memref<64x192xbf16, #tpu.memory_space<vmem>>, vector<64x192xbf16>,
    return
  }
  func.func @transform_0(%arg0: i32) -> (i32, i32) {
    %c0_i32 = arith.constant 0 : i32
    %c0_i32_0 = arith.constant 0 : i32
    return %arg0, %c0_i32 : i32, i32
  }
  func.func @transform_1(%arg0: i32) -> (i32, i32) {
    %c0_i32 = arith.constant 0 : i32
    %c0_i32_0 = arith.constant 0 : i32
    %c0_i32_1 = arith.constant 0 : i32
    return %c0_i32, %c0_i32_0 : i32, i32
  }
  func.func @transform_2(%arg0: i32) -> (i32, i32) {
    %c0_i32 = arith.constant 0 : i32
    %c0_i32_0 = arith.constant 0 : i32
    %c0_i32_1 = arith.constant 0 : i32
    return %c0_i32, %c0_i32_0 : i32, i32
  }
  func.func @transform_3(%arg0: i32) -> (i32, i32) {
    %c0_i32 = arith.constant 0 : i32
    %c0_i32_0 = arith.constant 0 : i32
    %c0_i32_1 = arith.constant 0 : i32
    return %c0_i32, %c0_i32_0 : i32, i32
  }
  func.func @transform_4(%arg0: i32) -> (i32, i32) {
    %c0_i32 = arith.constant 0 : i32
    %c0_i32_0 = arith.constant 0 : i32
    %c0_i32_1 = arith.constant 0 : i32
    return %c0_i32, %c0_i32_0 : i32, i32
  }
  func.func @transform_5(%arg0: i32) -> (i32, i32) {
    %c0_i32 = arith.constant 0 : i32
    %c0_i32_0 = arith.constant 0 : i32
    return %arg0, %c0_i32 : i32, i32
  }
}

</mosaic_0001>

<bundles_post_ra>
// kernel: tpu_custom_call.1
= control target key start
LH: loop header
LB: loop body
LE: loop exit
PB: predicated region body
PF: predicated region fallthrough
CT: control target
= control target key end

     0   :  { %s1155_s18 = smov 0   ;;  %s1457_s0 = inlined_call_operand.vmem [shape: bf16[256,192], index: 0, kind: input, shape index: {}]   ;;  %s1458_s1 = inlined_call_operand.vmem [shape: bf16[192,192], index: 1, kind: input, shape index: {}]   ;;  %s1459_s2 = inlined_call_operand.vmem [shape: f32[1,192], index: 2, kind: input, shape index: {}]   ;;  %s1460_s3 = inlined_call_operand.vmem [shape: bf16[192,192], index: 3, kind: input, shape index: {}]   ;;  %s1461_s4 = inlined_call_operand.vmem [shape: f32[1,192], index: 4, kind: input, shape index: {}]   ;;  %s1462_s5 = inlined_call_operand.vmem [shape: bf16[256,192], index: 5, kind: output, shape index: {}]  }
   0x1 LB: > { %s934_s19 = sadd.s32 4294967295, %s1123_s18   ;;  %p938_p0 = scmp.ge.s32.totalorder %s1123_s18, 1  ;;  %s1123_s18 = sphi %s1155_s18, %s15_s18  }
   0x2   : > { %p189_p1 = scmp.lt.s32.totalorder %s1123_s18, 5 }
   0x4   : > { %p190_p2 = pnand %p938_p0, %p189_p1 }
   0x5   : > { %v1037_v0 = vld [vmem:[%s1458_s1 + $0x4] ss:$8 sps:$4 sm:$0xff] (!%p190_p2)   ;;  %s939_s22 = sshll.u32 (!%p190_p2), %s934_s19, 3  ;;  %v1039_v1 = vld [vmem:[%s1458_s1] ss:$8 sps:$4 sm:$0xff] (!%p190_p2)   ;;  %vm434_vm0 = vcmask (!%p190_p2), 523264  }
   0x6   : > { %193 = sbr.rel (%p190_p2) target bundleno = 522 (0x20a), region = 40  ;;  %447 = vmatprep.subr.bf16.mxu0 (!%p190_p2), %v1037_v0  ;;  %v1040_v2 = vld [vmem:[%s1458_s1 + $0x14] ss:$8 sps:$4 sm:$0xff] (!%p190_p2)   ;;  %p220_p3 = scmp.lt.s32.totalorder (!%p190_p2), %s939_s22, 31  ;;  %v1042_v3 = vld [vmem:[%s1458_s1 + $0x10] ss:$8 sps:$4 sm:$0xff] (!%p190_p2)   ;;  %v268_v0 = vlaneseq (!%p190_p2) }
   0x7   : > { %448 = vmatpush1.bf16.msra.mxu0 (!%p190_p2), %v1039_v1  ;;  %v1043_v4 = vld [vmem:[%s1458_s1 + $0x24] ss:$8 sps:$4 sm:$0xff] (!%p190_p2)   ;;  %v1045_v5 = vld [vmem:[%s1458_s1 + $0x20] ss:$8 sps:$4 sm:$0xff] (!%p190_p2)   ;;  %v1046_v6 = vld [vmem:[%s1458_s1 + $0x34] ss:$8 sps:$4 sm:$0xff] (!%p190_p2)  }
   0x8   : > { %449 = vmatprep.subr.bf16.mxu0 (!%p190_p2), %v1040_v2  ;;  %v1048_v7 = vld [vmem:[%s1458_s1 + $0x30] ss:$8 sps:$4 sm:$0xff] (!%p190_p2)   ;;  %v1049_v8 = vld [vmem:[%s1458_s1 + $0x44] ss:$8 sps:$4 sm:$0xff] (!%p190_p2)   ;;  %v1051_v9 = vld [vmem:[%s1458_s1 + $0x40] ss:$8 sps:$4 sm:$0xff] (!%p190_p2)  }
   0x9   : > { %v1052_v10 = vld [vmem:[%s1458_s1 + $0x54] ss:$8 sps:$4 sm:$0xff] (!%p190_p2)   ;;  %v1054_v14 = vld [vmem:[%s1458_s1 + $0x50] ss:$8 sps:$4 sm:$0xff] (!%p190_p2)   ;;  %v1055_v15 = vld [vmem:[%s1458_s1 + $0x64] ss:$8 sps:$4 sm:$0xff] (!%p190_p2)  }
   0xa   : > { %v1081_v16 = vld [vmem:[%s1460_s3 + $0x4] ss:$8 sps:$4 sm:$0xff] (!%p190_p2)   ;;  %v1083_v17 = vld [vmem:[%s1460_s3] ss:$8 sps:$4 sm:$0xff] (!%p190_p2)   ;;  %v1084_v18 = vld [vmem:[%s1460_s3 + $0x14] ss:$8 sps:$4 sm:$0xff] (!%p190_p2)  }
   0xb   : > { %450 = vmatpush1.bf16.msra.mxu0 (!%p190_p2), %v1042_v3  ;;  %712 = vmatprep.subr.bf16.mxu1 (!%p190_p2), %v1081_v16  ;;  %v1086_v19 = vld [vmem:[%s1460_s3 + $0x10] ss:$8 sps:$4 sm:$0xff] (!%p190_p2)   ;;  %v1057_v20 = vld [vmem:[%s1458_s1 + $0x60] ss:$8 sps:$4 sm:$0xff] (!%p190_p2)   ;;  %v1087_v21 = vld [vmem:[%s1460_s3 + $0x24] ss:$8 sps:$4 sm:$0xff] (!%p190_p2)  }
   0xc   : > { %451 = vmatprep.subr.bf16.mxu0 (!%p190_p2), %v1043_v4  ;;  %713 = vmatpush1.bf16.msra.mxu1 (!%p190_p2), %v1083_v17  ;;  %v1058_v22 = vld [vmem:[%s1458_s1 + $0x74] ss:$8 sps:$4 sm:$0xff] (!%p190_p2)   ;;  %v1089_v23 = vld [vmem:[%s1460_s3 + $0x20] ss:$8 sps:$4 sm:$0xff] (!%p190_p2)   ;;  %v1060_v24 = vld [vmem:[%s1458_s1 + $0x70] ss:$8 sps:$4 sm:$0xff] (!%p190_p2)  }
   0xd   : > { %s1466_s22 = smov (!%p220_p3, %s939_s22), 31  ;;  %714 = vmatprep.subr.bf16.mxu1 %v1084_v18  ;;  %v1090_v25 = vld [vmem:[%s1460_s3 + $0x34] ss:$8 sps:$4 sm:$0xff]   ;;  %v1061_v26 = vld [vmem:[%s1458_s1 + $0x84] ss:$8 sps:$4 sm:$0xff]   ;;  %v1361_v1 = vshrl.u32 %v268_v0, 7 }
   0xe   : > { %s1019_s10 = sshll.u32 %s1466_s22, 3  ;;  %v1063_v27 = vld [vmem:[%s1458_s1 + $0x80] ss:$8 sps:$4 sm:$0xff]   ;;  %v1092_v28 = vld [vmem:[%s1460_s3 + $0x30] ss:$8 sps:$4 sm:$0xff]   ;;  %vm865_vm1 = vcmask 1043456  }
   0xf   : > { %452 = vmatpush1.bf16.msra.mxu0 %v1045_v5  ;;  %s1198_s17 = scalar_lea.vmem %s1457_s0, %s1019_s10  ;;  %v1064_v29 = vld [vmem:[%s1458_s1 + $0x94] ss:$8 sps:$4 sm:$0xff]   ;;  %v1093_v30 = vld [vmem:[%s1460_s3 + $0x44] ss:$8 sps:$4 sm:$0xff]   ;;  %v1095_v31 = vld [vmem:[%s1460_s3 + $0x40] ss:$8 sps:$4 sm:$0xff]   ;;  %s1400_s16 = scalar_lea.vmem %s1462_s5, %s1019_s10 }
  0x10   : > { %453 = vmatprep.subr.bf16.mxu0 %v1046_v6  ;;  %v1207_v11 = vld [vmem:[%s1198_s17] sm:$0xff]  ;;  %v1210_v12 = vld [vmem:[%s1198_s17 + $0x8] sm:$0xff]  ;;  %715 = vmatpush1.bf16.msra.mxu1 %v1086_v19  ;;  %v1066_v32 = vld [vmem:[%s1458_s1 + $0x90] ss:$8 sps:$4 sm:$0xff]   ;;  %v270_v2 = vsub.s32 0, %v1361_v1  ;;  %v274_v4 = vsub.s32 1, %v1361_v1 }
  0x11   : > { %v946_v13 = vcombine.high %v1207_v11, %v1210_v12  ;;  %716 = vmatprep.subr.bf16.mxu1 %v1087_v21  ;;  %v1096_v33 = vld [vmem:[%s1460_s3 + $0x54] ss:$8 sps:$4 sm:$0xff]   ;;  %v1067_v34 = vld [vmem:[%s1458_s1 + $0xa4] ss:$8 sps:$4 sm:$0xff]   ;;  %v1098_v35 = vld [vmem:[%s1460_s3 + $0x50] ss:$8 sps:$4 sm:$0xff]   ;;  %v945_v44 = vcombine.low %v1207_v11, %v1210_v12  ;;  %v788_v1 = vunpack.c.h.bf16 %v1210_v12 }
  0x12   : > { %v1069_v36 = vld [vmem:[%s1458_s1 + $0xa0] ss:$8 sps:$4 sm:$0xff]   ;;  %v1099_v37 = vld [vmem:[%s1460_s3 + $0x64] ss:$8 sps:$4 sm:$0xff]   ;;  %v1070_v38 = vld [vmem:[%s1458_s1 + $0xb4] ss:$8 sps:$4 sm:$0xff]  }
  0x13   : > { %454 = vmatpush1.bf16.msra.mxu0 %v1048_v7  ;;  %977 = vmatprep.mubr.msk.bf16.mxu0 %vm434_vm0, %v946_v13  ;;  %v1101_v39 = vld [vmem:[%s1460_s3 + $0x60] ss:$8 sps:$4 sm:$0xff]   ;;  %v1072_v40 = vld [vmem:[%s1458_s1 + $0xb0] ss:$8 sps:$4 sm:$0xff]   ;;  %v1102_v41 = vld [vmem:[%s1460_s3 + $0x74] ss:$8 sps:$4 sm:$0xff]  }
  0x14   : > { %455 = vmatprep.subr.bf16.mxu0 %v1049_v8  ;;  %717 = vmatpush1.bf16.msra.mxu1 %v1089_v23  ;;  %v1300_v42 = vld [vmem:[%s1198_s17 + $0x10] sm:$0xff]  ;;  %v1303_v43 = vld [vmem:[%s1198_s17 + $0x18] sm:$0xff]  ;;  %v1105_v47 = vld [vmem:[%s1460_s3 + $0x84] ss:$8 sps:$4 sm:$0xff]   ;;  %vm866_vm2 = vcmask 523268  }
  0x15   : > { %718 = vmatprep.subr.bf16.mxu1 %v1090_v25  ;;  %v1104_v45 = vld [vmem:[%s1460_s3 + $0x70] ss:$8 sps:$4 sm:$0xff]   ;;  %v948_v46 = vcombine.high %v1300_v42, %v1303_v43  ;;  %v1107_v48 = vld [vmem:[%s1460_s3 + $0x80] ss:$8 sps:$4 sm:$0xff]   ;;  %v1108_v49 = vld [vmem:[%s1460_s3 + $0x94] ss:$8 sps:$4 sm:$0xff]   ;;  %v947_v52 = vcombine.low %v1300_v42, %v1303_v43 }
  0x16   : > { %v1323_v50 = vld [vmem:[%s1198_s17 + $0x20] sm:$0xff]  ;;  %v1326_v51 = vld [vmem:[%s1198_s17 + $0x28] sm:$0xff]  ;;  %v1334_v54 = vld [vmem:[%s1198_s17 + $0x30] sm:$0xff] }
  0x17   : > { %456 = vmatpush1.bf16.msra.mxu0 %v1051_v9  ;;  %v950_v53 = vcombine.high %v1323_v50, %v1326_v51  ;;  %v1337_v55 = vld [vmem:[%s1198_s17 + $0x38] sm:$0xff]  ;;  %v949_v56 = vcombine.low %v1323_v50, %v1326_v51  ;;  %v1111_v60 = vld [vmem:[%s1460_s3 + $0xa4] ss:$8 sps:$4 sm:$0xff]   ;;  %v1113_v61 = vld [vmem:[%s1460_s3 + $0xa0] ss:$8 sps:$4 sm:$0xff]  }
  0x18   : > { %457 = vmatprep.subr.bf16.mxu0 %v1052_v10  ;;  %719 = vmatpush1.bf16.msra.mxu1 %v1092_v28  ;;  %v952_v57 = vcombine.high %v1334_v54, %v1337_v55  ;;  %v951_v58 = vcombine.low %v1334_v54, %v1337_v55  ;;  %v1110_v59 = vld [vmem:[%s1460_s3 + $0x90] ss:$8 sps:$4 sm:$0xff]   ;;  %v1114_v62 = vld [vmem:[%s1460_s3 + $0xb4] ss:$8 sps:$4 sm:$0xff]   ;;  %v266_v3 = vld [vmem:[%s1459_s2] sm:$0x3] }
  0x19   : > { %720 = vmatprep.subr.bf16.mxu1 %v1093_v30  ;;  %v1116_v63 = vld [vmem:[%s1460_s3 + $0xb0] ss:$8 sps:$4 sm:$0xff]   ;;  %v271_v5 = vrot.slane %v266_v3, %v270_v2  ;;  %v275_v6 = vrot.slane %v266_v3, %v274_v4  ;;  %vm1402_vm3 = vmor %vm866_vm2, %vm865_vm1 }
  0x1b   : > { %458 = vmatpush1.bf16.msra.mxu0 %v1054_v14 }
  0x1c   : > { %459 = vmatprep.subr.bf16.mxu0 %v1055_v15  ;;  %721 = vmatpush1.bf16.msra.mxu1 %v1095_v31 }
  0x1d   : > { %722 = vmatprep.subr.bf16.mxu1 %v1096_v33 }
  0x1f   : > { %460 = vmatpush1.bf16.msra.mxu0 %v1057_v20 }
  0x20   : > { %461 = vmatprep.subr.bf16.mxu0 %v1058_v22  ;;  %723 = vmatpush1.bf16.msra.mxu1 %v1098_v35 }
  0x21   : > { %724 = vmatprep.subr.bf16.mxu1 %v1099_v37 }
  0x23   : > { %462 = vmatpush1.bf16.msra.mxu0 %v1060_v24 }
  0x24   : > { %463 = vmatprep.subr.bf16.mxu0 %v1061_v26  ;;  %725 = vmatpush1.bf16.msra.mxu1 %v1101_v39 }
  0x25   : > { %726 = vmatprep.subr.bf16.mxu1 %v1102_v41 }
  0x27   : > { %464 = vmatpush1.bf16.msra.mxu0 %v1063_v27 }
  0x28   : > { %465 = vmatprep.subr.bf16.mxu0 %v1064_v29  ;;  %727 = vmatpush1.bf16.msra.mxu1 %v1104_v45 }
  0x29   : > { %728 = vmatprep.subr.bf16.mxu1 %v1105_v47 }
  0x2b   : > { %466 = vmatpush1.bf16.msra.mxu0 %v1066_v32 }
  0x2c   : > { %467 = vmatprep.subr.bf16.mxu0 %v1067_v34  ;;  %729 = vmatpush1.bf16.msra.mxu1 %v1107_v48 }
  0x2d   : > { %730 = vmatprep.subr.bf16.mxu1 %v1108_v49 }
  0x2f   : > { %468 = vmatpush1.bf16.msra.mxu0 %v1069_v36 }
  0x30   : > { %469 = vmatprep.subr.bf16.mxu0 %v1070_v38  ;;  %731 = vmatpush1.bf16.msra.mxu1 %v1110_v59 }
  0x31   : > { %732 = vmatprep.subr.bf16.mxu1 %v1111_v60 }
  0x33   : > { %470 = vmatpush1.bf16.msra.mxu0 %v1072_v40 }
  0x34   : > { %733 = vmatpush1.bf16.msra.mxu1 %v1113_v61 }
  0x35   : > { %734 = vmatprep.subr.bf16.mxu1 %v1114_v62 }
  0x36   : > { %480 = vmatmul.mubr.bf16.vlgmr.msra.gmra.mrb[0].mxu0 %v945_v44 }
  0x37   : > { %978 = vmatprep.mubr.msk.bf16.mxu0 %vm434_vm0, %v948_v46 }
  0x38   : > { %735 = vmatpush1.bf16.msra.mxu1 %v1116_v63 }
  0x3e   : > { %490 = vmatmul.mubr.bf16.gmra.mrb[4].mxu0 %v947_v52 }
  0x3f   : > { %979 = vmatprep.mubr.msk.bf16.mxu0 %vm434_vm0, %v950_v53 }
  0x46   : > { %500 = vmatmul.mubr.bf16.gmra.mrb[8].mxu0 %v949_v56 }
  0x47   : > { %980 = vmatprep.mubr.msk.bf16.mxu0 %vm434_vm0, %v952_v57 }
  0x4e   : > { %510 = vmatmul.mubr.bf16.gmra.mrb[12].mxu0 %v951_v58 }
 0x109   : > { %v481_v7 = vpop.f32.mrb[0].mxu0 }
 0x10a   : > { %v482_v8 = vadd.f32 %v481_v7, %v271_v5  ;;  %v483_v9 = vpop.f32.mrb[1].mxu0 }
 0x10b   : > { %v484_v10 = vadd.f32 %v483_v9, %v275_v6  ;;  %v485_v13 = vpop.f32.mrb[2].mxu0 }
 0x10c   : > { %v486_v14 = vadd.f32 %v485_v13, %v271_v5  ;;  %v487_v15 = vpop.f32.mrb[3].mxu0  ;;  %v520_v17 = vmax.f32 %v482_v8, 0.0 }
 0x10d   : > { %v488_v16 = vadd.f32 %v487_v15, %v275_v6  ;;  %v521_v19 = vmax.f32 %v484_v10, 0.0 }
 0x10e   : > { %v522_v18 = vmax.f32 %v486_v14, 0.0  ;;  %v568_v14 = vld [vmem:[%s1461_s4] sm:$0x3] }
 0x10f   : > { %v523_v20 = vmax.f32 %v488_v16, 0.0  ;;  %v1381_v15 = vrot.slane %v568_v14, %v270_v2 }
 0x110   : > { %v536_v21 = vpack.c.bf16 %v522_v18, %v520_v17  ;;  %v786_v17 = vunpack.c.h.bf16 %v1207_v11 }
 0x111   : > { %v491_v22 = vpop.f32.mrb[4].mxu0  ;;  %v537_v23 = vpack.c.bf16 %v523_v20, %v521_v19  ;;  %v787_v20 = vunpack.c.l.bf16 %v1210_v12 }
 0x112   : > { %v492_v24 = vadd.f32 %v491_v22, %v271_v5  ;;  %v493_v25 = vpop.f32.mrb[5].mxu0 }
 0x113   : > { %v494_v26 = vadd.f32 %v493_v25, %v275_v6  ;;  %v495_v27 = vpop.f32.mrb[6].mxu0  ;;  %1005 = vmatprep.mubr.msk.bf16.mxu1 %vm434_vm0, %v537_v23 }
 0x114   : > { %v496_v28 = vadd.f32 %v495_v27, %v271_v5  ;;  %v497_v29 = vpop.f32.mrb[7].mxu0  ;;  %745 = vmatmul.mubr.bf16.vlgmr.msra.gmra.mrb[0].mxu1 %v536_v21  ;;  %v524_v31 = vmax.f32 %v492_v24, 0.0 }
 0x115   : > { %v498_v30 = vadd.f32 %v497_v29, %v275_v6  ;;  %v525_v33 = vmax.f32 %v494_v26, 0.0 }
 0x116   : > { %v526_v32 = vmax.f32 %v496_v28, 0.0  ;;  %v789_v28 = vunpack.c.l.bf16 %v1300_v42 }
 0x117   : > { %v527_v34 = vmax.f32 %v498_v30, 0.0 }
 0x118   : > { %v538_v35 = vpack.c.bf16 %v526_v32, %v524_v31  ;;  %v790_v31 = vunpack.c.h.bf16 %v1300_v42 }
 0x119   : > { %v539_v36 = vpack.c.bf16 %v527_v34, %v525_v33  ;;  %v501_v37 = vpop.f32.mrb[8].mxu0  ;;  %v791_v34 = vunpack.c.l.bf16 %v1303_v43 }
 0x11a   : > { %v502_v38 = vadd.f32 %v501_v37, %v271_v5  ;;  %v503_v39 = vpop.f32.mrb[9].mxu0  ;;  %v792_v37 = vunpack.c.h.bf16 %v1303_v43  ;;  %v794_v43 = vunpack.c.h.bf16 %v1323_v50 }
 0x11b   : > { %v504_v40 = vadd.f32 %v503_v39, %v275_v6  ;;  %v505_v41 = vpop.f32.mrb[10].mxu0  ;;  %1006 = vmatprep.mubr.msk.bf16.mxu1 %vm434_vm0, %v539_v36 }
 0x11c   : > { %v506_v44 = vadd.f32 %v505_v41, %v271_v5  ;;  %v507_v45 = vpop.f32.mrb[11].mxu0  ;;  %755 = vmatmul.mubr.bf16.gmra.mrb[4].mxu1 %v538_v35  ;;  %v528_v47 = vmax.f32 %v502_v38, 0.0 }
 0x11d   : > { %v508_v46 = vadd.f32 %v507_v45, %v275_v6  ;;  %v529_v49 = vmax.f32 %v504_v40, 0.0 }
 0x11e   : > { %v530_v48 = vmax.f32 %v506_v44, 0.0 }
 0x11f   : > { %v531_v52 = vmax.f32 %v508_v46, 0.0 }
 0x120   : > { %v540_v53 = vpack.c.bf16 %v530_v48, %v528_v47  ;;  %v793_v47 = vunpack.c.l.bf16 %v1323_v50 }
 0x121   : > { %v541_v56 = vpack.c.bf16 %v531_v52, %v529_v49  ;;  %v511_v57 = vpop.f32.mrb[12].mxu0 }
 0x122   : > { %v512_v58 = vadd.f32 %v511_v57, %v271_v5  ;;  %v513_v59 = vpop.f32.mrb[13].mxu0 }
 0x123   : > { %v514_v60 = vadd.f32 %v513_v59, %v275_v6  ;;  %v515_v61 = vpop.f32.mrb[14].mxu0  ;;  %1007 = vmatprep.mubr.msk.bf16.mxu1 %vm434_vm0, %v541_v56  ;;  %v795_v56 = vunpack.c.l.bf16 %v1326_v51  ;;  %v796_v59 = vunpack.c.h.bf16 %v1326_v51  ;;  %v798_v51 = vunpack.c.h.bf16 %v1334_v54 }
 0x124   : > { %v516_v62 = vadd.f32 %v515_v61, %v271_v5  ;;  %v517_v63 = vpop.f32.mrb[15].mxu0  ;;  %765 = vmatmul.mubr.bf16.gmra.mrb[8].mxu1 %v540_v53  ;;  %v532_v3 = vmax.f32 %v512_v58, 0.0  ;;  %v1385_v5 = vrot.slane %v568_v14, %v274_v4 }
 0x125   : > { %v518_v0 = vadd.f32 %v517_v63, %v275_v6  ;;  %v533_v8 = vmax.f32 %v514_v60, 0.0  ;;  %v785_v6 = vunpack.c.l.bf16 %v1207_v11 }
 0x126   : > { %v534_v7 = vmax.f32 %v516_v62, 0.0 }
 0x127   : > { %v535_v9 = vmax.f32 %v518_v0, 0.0 }
 0x128   : > { %v542_v10 = vpack.c.bf16 %v534_v7, %v532_v3 }
 0x129   : > { %v543_v13 = vpack.c.bf16 %v535_v9, %v533_v8  ;;  %v797_v8 = vunpack.c.l.bf16 %v1334_v54 }
 0x12b   : > { %1008 = vmatprep.mubr.msk.bf16.mxu1 %vm434_vm0, %v543_v13 }
 0x12c   : > { %775 = vmatmul.mubr.bf16.gmra.mrb[12].mxu1 %v542_v10 }
 0x1e7   : > { %v746_v16 = vpop.f32.mrb[0].mxu1 }
 0x1e8   : > { %v747_v18 = vadd.f32 %v746_v16, %v1381_v15  ;;  %v748_v19 = vpop.f32.mrb[1].mxu1 }
 0x1e9   : > { %v749_v21 = vadd.f32 %v748_v19, %v1385_v5  ;;  %v750_v2 = vpop.f32.mrb[2].mxu1 }
 0x1ea   : > { %v801_v4 = vadd.f32 %v785_v6, %v747_v18  ;;  %v751_v22 = vadd.f32 %v750_v2, %v1381_v15  ;;  %v752_v23 = vpop.f32.mrb[3].mxu1  ;;  %v799_v6 = vunpack.c.l.bf16 %v1337_v55  ;;  %v800_v18 = vunpack.c.h.bf16 %v1337_v55 }
 0x1eb   : > { %v802_v24 = vadd.f32 %v786_v17, %v749_v21  ;;  %v753_v25 = vadd.f32 %v752_v23, %v1385_v5 }
 0x1ec   : > { %v803_v12 = vadd.f32 %v787_v20, %v751_v22 }
 0x1ed   : > { %v1021_v26 = vpack.c.bf16 %v802_v24, %v801_v4  ;;  %v804_v27 = vadd.f32 %v788_v1, %v753_v25 }
 0x1ef   : > { %868 = vst.msk [vmem:[%s1400_s16] sm:$0xff] %vm1402_vm3, %v1021_v26  ;;  %v1022_v29 = vpack.c.bf16 %v804_v27, %v803_v12  ;;  %v756_v30 = vpop.f32.mrb[4].mxu1 }
 0x1f0   : > { %v757_v32 = vadd.f32 %v756_v30, %v1381_v15  ;;  %v758_v33 = vpop.f32.mrb[5].mxu1 }
 0x1f1   : > { %869 = vst.msk [vmem:[%s1400_s16 + $0x8] sm:$0xff] %vm1402_vm3, %v1022_v29  ;;  %v759_v35 = vadd.f32 %v758_v33, %v1385_v5  ;;  %v760_v36 = vpop.f32.mrb[6].mxu1 }
 0x1f2   : > { %v805_v38 = vadd.f32 %v789_v28, %v757_v32  ;;  %v761_v39 = vadd.f32 %v760_v36, %v1381_v15  ;;  %v762_v40 = vpop.f32.mrb[7].mxu1 }
 0x1f3   : > { %v806_v42 = vadd.f32 %v790_v31, %v759_v35  ;;  %v763_v41 = vadd.f32 %v762_v40, %v1385_v5 }
 0x1f4   : > { %v807_v44 = vadd.f32 %v791_v34, %v761_v39 }
 0x1f5   : > { %v1023_v45 = vpack.c.bf16 %v806_v42, %v805_v38  ;;  %v808_v46 = vadd.f32 %v792_v37, %v763_v41 }
 0x1f7   : > { %870 = vst.msk [vmem:[%s1400_s16 + $0x10] sm:$0xff] %vm1402_vm3, %v1023_v45  ;;  %v1024_v48 = vpack.c.bf16 %v808_v46, %v807_v44  ;;  %v766_v49 = vpop.f32.mrb[8].mxu1 }
 0x1f8   : > { %v767_v52 = vadd.f32 %v766_v49, %v1381_v15  ;;  %v768_v53 = vpop.f32.mrb[9].mxu1 }
 0x1f9   : > { %871 = vst.msk [vmem:[%s1400_s16 + $0x18] sm:$0xff] %vm1402_vm3, %v1024_v48  ;;  %v769_v57 = vadd.f32 %v768_v53, %v1385_v5  ;;  %v770_v58 = vpop.f32.mrb[10].mxu1 }
 0x1fa   : > { %v809_v60 = vadd.f32 %v793_v47, %v767_v52  ;;  %v771_v61 = vadd.f32 %v770_v58, %v1381_v15  ;;  %v772_v62 = vpop.f32.mrb[11].mxu1 }
 0x1fb   : > { %v810_v50 = vadd.f32 %v794_v43, %v769_v57  ;;  %v773_v63 = vadd.f32 %v772_v62, %v1385_v5 }
 0x1fc   : > { %v811_v0 = vadd.f32 %v795_v56, %v771_v61 }
 0x1fd   : > { %v1025_v3 = vpack.c.bf16 %v810_v50, %v809_v60  ;;  %v812_v7 = vadd.f32 %v796_v59, %v773_v63 }
 0x1ff   : > { %872 = vst.msk [vmem:[%s1400_s16 + $0x20] sm:$0xff] %vm1402_vm3, %v1025_v3  ;;  %v1026_v9 = vpack.c.bf16 %v812_v7, %v811_v0  ;;  %v776_v10 = vpop.f32.mrb[12].mxu1 }
 0x200   : > { %v777_v13 = vadd.f32 %v776_v10, %v1381_v15  ;;  %v778_v14 = vpop.f32.mrb[13].mxu1 }
 0x201   : > { %873 = vst.msk [vmem:[%s1400_s16 + $0x28] sm:$0xff] %vm1402_vm3, %v1026_v9  ;;  %v779_v16 = vadd.f32 %v778_v14, %v1385_v5  ;;  %v780_v17 = vpop.f32.mrb[14].mxu1 }
 0x202   : > { %v813_v19 = vadd.f32 %v797_v8, %v777_v13  ;;  %v781_v20 = vadd.f32 %v780_v17, %v1381_v15  ;;  %v782_v21 = vpop.f32.mrb[15].mxu1 }
 0x203   : > { %v814_v54 = vadd.f32 %v798_v51, %v779_v16  ;;  %v783_v2 = vadd.f32 %v782_v21, %v1385_v5 }
 0x204   : > { %v815_v1 = vadd.f32 %v799_v6, %v781_v20 }
 0x205   : > { %v1027_v4 = vpack.c.bf16 %v814_v54, %v813_v19  ;;  %v816_v22 = vadd.f32 %v800_v18, %v783_v2 }
 0x207   : > { %874 = vst.msk [vmem:[%s1400_s16 + $0x30] sm:$0xff] %vm1402_vm3, %v1027_v4  ;;  %v1028_v23 = vpack.c.bf16 %v816_v22, %v815_v1 }
 0x209   : > { %875 = vst.msk [vmem:[%s1400_s16 + $0x38] sm:$0xff] %vm1402_vm3, %v1028_v23 }
 0x20a PF: > { %s15_s18 = sadd.s32 1, %s1123_s18  }
 0x20b   : > { %p12_p4 = scmp.ge.s32.totalorder %s15_s18, 6  }
 0x20d   :  { %14 = sbr.rel (!%p12_p4) target bundleno = 1 (0x1), region = 70 }

</bundles_post_ra>
